<compile_context>
chip_gen: v7x
topology: tpu7x:2x2x1
jax: 0.10.0
libtpu: 0.0.40
codegen_flags: <defaults>
</compile_context>

<pallas_src>
import functools
import math

import jax
import jax.numpy as jnp
from jax.experimental import pallas as pl
from jax.experimental.pallas import tpu as pltpu


def _build_pe(d_model: int, max_len: int) -> jnp.ndarray:
    """Reference: replicates the torch PositionEncoding buffer `pe` (max_len, d_model)."""
    position = jnp.arange(0, max_len, dtype=jnp.float32)[:, None]          # (max_len, 1)
    embedding_index = jnp.arange(0, d_model, 2, dtype=jnp.float32)          # (ceil(d/2),)
    div_term = 1.0 / (jnp.float32(10000.0) ** (embedding_index / d_model))  # (ceil(d/2),)
    angles = position * div_term                                            # (max_len, ceil(d/2))
    pe = jnp.zeros((max_len, d_model), dtype=jnp.float32)
    n_even = angles.shape[1]
    n_odd = d_model // 2
    pe = pe.at[:, 0::2].set(jnp.sin(angles)[:, :n_even])
    pe = pe.at[:, 1::2].set(jnp.cos(angles)[:, :n_odd])
    return pe


def _freq_phase_table(d_model: int) -> jnp.ndarray:
    """(2, d_model) f32 table: row 0 = per-lane inv_freq, row 1 = phase (0 even / pi/2 odd).

    pe[p, j] = sin(p * inv_freq[j] + phase[j]) with inv_freq[j] = 10000^(-(j - j%2)/d),
    matching the torch buffer (cos(x) == sin(x + pi/2)).
    """
    j = jnp.arange(d_model, dtype=jnp.float32)
    odd = jnp.mod(j, 2.0)
    even_idx = j - odd                                       # 2 * (j // 2)
    inv_freq = jnp.float32(10000.0) ** (-(even_idx / jnp.float32(d_model)))
    phase = odd * jnp.float32(math.pi / 2.0)
    return jnp.stack([inv_freq, phase], axis=0)              # (2, d_model)


def _pe_add_kernel(tab_ref, x_ref, o_ref, *, tile_s: int):
    """out = x + pe[pos, lane]; pe generated with a single sin per element."""
    i = pl.program_id(0)
    inv_freq = tab_ref[0:1, :]                                # (1, d) lane-only, resident
    phase = tab_ref[1:2, :]                                   # (1, d)
    row = jax.lax.broadcasted_iota(jnp.int32, (tile_s, 1), 0)
    pos = (row + i * tile_s).astype(jnp.float32)              # (tile_s, 1)
    pe_tile = jnp.sin(pos * inv_freq + phase)                 # (tile_s, d), f32
    # Add in the output dtype (bf16 add on v6e/v7x for bf16 inputs; f32 otherwise).
    o_ref[...] = x_ref[...] + pe_tile.astype(o_ref.dtype)


# Per-block byte cap keeps double-buffered in+out plus f32 temporaries well under
# the scoped-VMEM limit on v5e (16 MiB default), v6e (32 MiB) and v7x (64 MiB phys).
_BLOCK_BYTE_CAP = 2 * 1024 * 1024
_MAX_TILE_ROWS = 1024  # diminishing returns past ~1024 rows; per-step overhead already amortized


def _choose_tile_s(seq: int, d_model: int, itemsize: int) -> int:
    rows = _BLOCK_BYTE_CAP // max(1, d_model * itemsize)
    rows = max(8, min(_MAX_TILE_ROWS, (rows // 8) * 8))       # multiple of 8 sublanes
    return seq if seq <= rows else rows                       # full-extent block for short seq


def position_encoding_forward(word_embeddings: jnp.ndarray,
                              max_len: int | None = None) -> jnp.ndarray:
    """word_embeddings: [seq, d_model]; returns word_embeddings + pe[:seq, :]."""
    seq, d_model = word_embeddings.shape
    if max_len is not None and seq > max_len:
        raise ValueError(f"seq ({seq}) exceeds max_len ({max_len})")

    if d_model % 128 != 0:
        # Lane-density guard: non-multiple-of-128 widths would hit masked partial
        # stores; such (tiny) widths take the plain XLA path with identical semantics.
        pe = _build_pe(d_model, seq)
        return word_embeddings + pe.astype(word_embeddings.dtype)

    itemsize = jnp.dtype(word_embeddings.dtype).itemsize
    tile_s = _choose_tile_s(seq, d_model, itemsize)
    grid = (pl.cdiv(seq, tile_s),)
    table = _freq_phase_table(d_model)
    kernel = functools.partial(_pe_add_kernel, tile_s=tile_s)

    return pl.pallas_call(
        kernel,
        out_shape=jax.ShapeDtypeStruct((seq, d_model), word_embeddings.dtype),
        grid_spec=pl.GridSpec(
            grid=grid,
            in_specs=[
                pl.BlockSpec((2, d_model), lambda i: (0, 0)),        # resident freq/phase table
                pl.BlockSpec((tile_s, d_model), lambda i: (i, 0)),   # x tile (lane-dense)
            ],
            out_specs=pl.BlockSpec((tile_s, d_model), lambda i: (i, 0)),
        ),
        compiler_params=pltpu.CompilerParams(
            dimension_semantics=("parallel",),        # independent tiles -> megacore on v7x
            vmem_limit_bytes=32 * 1024 * 1024,        # headroom for f32 temps at wide d_model
        ),
        cost_estimate=pl.CostEstimate(
            flops=3 * seq * d_model,                               # fma for angle + add x
            transcendentals=seq * d_model,                          # exactly one sin per element
            bytes_accessed=2 * seq * d_model * itemsize + 2 * d_model * 4,
        ),
    )(table, word_embeddings)


if __name__ == "__main__":
    key = jax.random.PRNGKey(0)

    # Primary demo: small lane-dense shape (seq=8, d_model=128) -> Pallas path.
    seq, d_model, max_len = 8, 128, 16
    x = jax.random.normal(key, (seq, d_model), dtype=jnp.float32)
    out = jax.block_until_ready(position_encoding_forward(x, max_len=max_len))
    ref = x + _build_pe(d_model, max_len)[:seq, :]
    assert out.shape == (seq, d_model)
    assert jnp.allclose(out, ref, atol=1e-5, rtol=1e-5), "mismatch vs reference (small, pallas)"

    # Multi-tile Pallas path (grid > 1, 1024-row byte-capped tiles).
    seq2, d2 = 2048, 512
    x2 = jax.random.normal(jax.random.PRNGKey(0), (seq2, d2), dtype=jnp.float32)
    out2 = jax.block_until_ready(position_encoding_forward(x2))
    ref2 = x2 + _build_pe(d2, seq2)
    # sin(x + pi/2) vs cos(x) differs by <= ~half an ulp of the angle magnitude at
    # large positions; tolerance loosened accordingly (still negligible for PE).
    assert jnp.allclose(out2, ref2, atol=5e-4, rtol=1e-4), "mismatch vs reference (tiled)"

    # Module-like small width (d_model=32) exercises the lane-density fallback.
    x3 = jax.random.normal(jax.random.PRNGKey(0), (8, 32), dtype=jnp.float32)
    out3 = jax.block_until_ready(position_encoding_forward(x3, max_len=16))
    ref3 = x3 + _build_pe(32, 16)[:8, :]
    assert jnp.allclose(out3, ref3, atol=1e-5, rtol=1e-5), "mismatch vs reference (fallback)"

    print("KERNEL_OK")
</pallas_src>

<mosaic_0001>
module attributes {stable_mosaic.version = 11 : i64} {
  func.func @_pe_add_kernel(%arg0: i32, %arg1: memref<2x128xf32, #tpu.memory_space<vmem>>, %arg2: memref<8x128xf32, #tpu.memory_space<vmem>>, %arg3: memref<8x128xf32, #tpu.memory_space<vmem>>) attributes {dimension_semantics = [#tpu.dimension_semantics<parallel>], iteration_bounds = array<i64: 1>, scalar_prefetch = 0 : i64, scratch_operands = 0 : i64, tpu.core_type = #tpu.core_type<tc>, window_params = [{pipeline_mode = #tpu.pipeline_mode<synchronous>, transform_indices = @transform_0, window_bounds = array<i64: 2, 128>}, {transform_indices = @transform_1, window_bounds = array<i64: 8, 128>}, {transform_indices = @transform_2, window_bounds = array<i64: 8, 128>}]} {
    %c0 = arith.constant 0 : index
    %c0_0 = arith.constant 0 : index
    %0 = vector.load %arg1[%c0, %c0_0] : memref<2x128xf32, #tpu.memory_space<vmem>>, vector<1x128xf32>
    %c1 = arith.constant 1 : index
    %c0_1 = arith.constant 0 : index
    %1 = vector.load %arg1[%c1, %c0_1] : memref<2x128xf32, #tpu.memory_space<vmem>>, vector<1x128xf32>
    %2 = tpu.iota {dimensions = array<i32: 0>} : vector<8x1xi32>
    %c8_i32 = arith.constant 8 : i32
    %3 = arith.muli %arg0, %c8_i32 : i32
    %4 = vector.broadcast %3 : i32 to vector<8x1xi32>
    %5 = arith.addi %2, %4 : vector<8x1xi32>
    %6 = arith.sitofp %5 : vector<8x1xi32> to vector<8x1xf32>
    %7 = vector.broadcast %6 : vector<8x1xf32> to vector<8x128xf32>
    %8 = vector.broadcast %0 : vector<1x128xf32> to vector<8x128xf32>
    %9 = arith.mulf %7, %8 : vector<8x128xf32>
    %10 = vector.broadcast %1 : vector<1x128xf32> to vector<8x128xf32>
    %11 = arith.addf %9, %10 : vector<8x128xf32>
    %12 = math.sin %11 : vector<8x128xf32>
    %c0_2 = arith.constant 0 : index
    %c0_3 = arith.constant 0 : index
    %13 = vector.load %arg2[%c0_2, %c0_3] : memref<8x128xf32, #tpu.memory_space<vmem>>, vector<8x128xf32>
    %14 = arith.addf %13, %12 : vector<8x128xf32>
    %c0_4 = arith.constant 0 : index
    %c0_5 = arith.constant 0 : index
    %15 = vector.load %arg3[%c0_4, %c0_5] : memref<8x128xf32, #tpu.memory_space<vmem>>, vector<8x128xf32>
    tpu.vector_store %arg3[%c0_4, %c0_5], %14 {strides = array<i32>} : memref<8x128xf32, #tpu.memory_space<vmem>>, vector<8x128xf32>,
    return
  }
  func.func @transform_0(%arg0: i32) -> (i32, i32) {
    %c0_i32 = arith.constant 0 : i32
    %c0_i32_0 = arith.constant 0 : i32
    %c0_i32_1 = arith.constant 0 : i32
    return %c0_i32, %c0_i32_0 : i32, i32
  }
  func.func @transform_1(%arg0: i32) -> (i32, i32) {
    %c0_i32 = arith.constant 0 : i32
    %c0_i32_0 = arith.constant 0 : i32
    return %arg0, %c0_i32 : i32, i32
  }
  func.func @transform_2(%arg0: i32) -> (i32, i32) {
    %c0_i32 = arith.constant 0 : i32
    %c0_i32_0 = arith.constant 0 : i32
    return %arg0, %c0_i32 : i32, i32
  }
}

</mosaic_0001>

<bundles_post_ra>
// kernel: tpu_custom_call.1
= control target key start
LH: loop header
LB: loop body
LE: loop exit
PB: predicated region body
PF: predicated region fallthrough
CT: control target
= control target key end

     0   :  { %7 = vsyncpa [#allocation3], 0  ;;  %s353_s0 = inlined_call_operand.hbm [shape: f32[2,128], index: 0, kind: input, shape index: {}]   ;;  %s354_s1 = inlined_call_operand.hbm [shape: f32[8,128], index: 1, kind: input, shape index: {}]   ;;  %s355_s2 = inlined_call_operand.hbm [shape: f32[8,128], index: 2, kind: output, shape index: {}]  }
   0x1   :  { %8 = vsyncpa [#allocation6], 0 }
   0x2   :  { %9 = vsyncpa [#allocation4], 0  ;;  %s272_s9 = smov [#allocation2]   ;;  %s273_s11 = smov [#allocation5]  }
   0x3   :  { %s16_s10 = sshll.u32 %s272_s9, 4  ;;  %s26_s12 = sshll.u32 %s273_s11, 4  ;;  %s17_s10 = int_to_ptr.vmem [resolvable:$true] %s16_s10  ;;  %s27_s12 = int_to_ptr.vmem [resolvable:$true] %s26_s12 }
   0x4   :  { %s200_s15 = scalar_lea.hbm %s353_s0, 32 }
   0x5   :  { %p201_p0 = scmp.ne.s32.totalorder %s353_s0, %s200_s15  ;;  %p204_p1 = scmp.lt.u32.totalorder %s200_s15, %s353_s0 }
   0x7   :  { %p206_p2 = pnand %p204_p1, %p201_p0 }
   0x9   :  { %209 = shalt.err (!%p206_p2)
}
   0xa   :  { %s210_s20 = scalar_lea.vmem %s17_s10, 32  ;;  %p215_p4 = scmp.lt.s32.totalorder %s17_s10, %s17_s10 }
   0xb   :  { %p211_p3 = scmp.ne.s32.totalorder %s17_s10, %s210_s20  ;;  %p216_p5 = scmp.lt.s32.totalorder %s210_s20, %s210_s20 }
   0xd   :  { %p217_p6 = por %p216_p5, %p215_p4 }
   0xf   :  { %p218_p7 = pnand %p217_p6, %p211_p3 }
  0x11   :  { %221 = shalt.err (!%p218_p7)
}
  0x12   :  { %19 = dma.hbm_to_vmem [thread:$0]  %s353_s0, 32, %s17_s10, [#allocation3]  }
  0x13   :  { %s222_s25 = scalar_lea.hbm %s354_s1, 128 }
  0x14   :  { %p223_p8 = scmp.ne.s32.totalorder %s354_s1, %s222_s25  ;;  %p226_p9 = scmp.lt.u32.totalorder %s222_s25, %s354_s1 }
  0x16   :  { %p228_p10 = pnand %p226_p9, %p223_p8 }
  0x18   :  { %231 = shalt.err (!%p228_p10)
}
  0x19   :  { %s232_s30 = scalar_lea.vmem %s27_s12, 128  ;;  %p237_p12 = scmp.lt.s32.totalorder %s27_s12, %s27_s12 }
  0x1a   :  { %p233_p11 = scmp.ne.s32.totalorder %s27_s12, %s232_s30  ;;  %p238_p13 = scmp.lt.s32.totalorder %s232_s30, %s232_s30 }
  0x1c   :  { %p239_p0 = por %p238_p13, %p237_p12 }
  0x1e   :  { %p240_p1 = pnand %p239_p0, %p233_p11 }
  0x20   :  { %243 = shalt.err (!%p240_p1)
}
  0x21   :  { %29 = dma.hbm_to_vmem [thread:$0]  %s354_s1, 128, %s27_s12, [#allocation6]  }
  0x22   :  { %266 = dma.done.wait [#allocation3], 32  }
  0x23   :  { %267 = vsyncadd [#allocation3], 4294967264 }
  0x24   :  { %268 = dma.done.wait [#allocation6], 128  }
  0x25   :  { %269 = vsyncadd [#allocation6], 4294967168  ;;  %v38_v0 = vlaneseq  ;;  %v177_v3 = vld [vmem:[#allocation2] ss:$0 sm:$0xff]  ;;  %v178_v4 = vld [vmem:[#allocation2 + $0x1] ss:$0 sm:$0xff] }
  0x26   :  { %v274_v18 = vmov 683565275   ;;  %v275_v20 = vmov 2475754826   ;;  %v276_v22 = vmov 2131351028  }
  0x27   :  { %v39_v1 = vshrl.u32 %v38_v0, 7  ;;  %v277_v24 = vmov 2102212464   ;;  %v278_v26 = vmov 920167782   ;;  %s280_s1 = smov [#allocation7]  }
  0x28   :  { %v279_v33 = vmov 1326507024   ;;  %s167_s4 = sshll.u32 %s280_s1, 4  ;;  %s168_s4 = int_to_ptr.vmem [resolvable:$true] %s167_s4 }
  0x29   :  { %v43_v2 = vcvt.s32.f32 %v39_v1  ;;  %s244_s5 = scalar_lea.vmem %s168_s4, 128  ;;  %p249_p3 = scmp.lt.s32.totalorder %s168_s4, %s168_s4 }
  0x2a   :  { %p245_p2 = scmp.ne.s32.totalorder %s168_s4, %s244_s5  ;;  %p250_p4 = scmp.lt.s32.totalorder %s244_s5, %s244_s5 }
  0x2b   :  { %v48_v5 = vmul.f32 %v177_v3, %v43_v2 }
  0x2c   :  { %p251_p5 = por %p250_p4, %p249_p3 }
  0x2d   :  { %v320_v6 = vadd.f32 %v178_v4, %v48_v5 }
  0x2e   :  { %p252_p6 = pnand %p251_p5, %p245_p2 }
  0x2f   :  { %v57_v7 = vand.u32 2139095040, %v320_v6  ;;  %v54_v9 = vand.u32 2147483647, %v320_v6  ;;  %vm56_vm7 = vcmp.lt.s32.totalorder %v320_v6, 0  ;;  %vm146_vm12 = vweird.f32 %v320_v6 }
  0x31   :  { %v58_v8 = vshrl.u32 %v57_v7, 23  ;;  %v61_v12 = vand.u32 8388607, %v54_v9  ;;  %vm55_vm8 = vcmp.le.f32.partialorder %v54_v9, 0.7853982 }
  0x33   :  { %v179_v10 = vadd.s32 4294967169, %v58_v8  ;;  %v62_v15 = vor.u32 8388608, %v61_v12 }
  0x35   :  { %v64_v11 = vadd.s32 1, %v179_v10  ;;  %v102_v35 = vshll.u32 %v62_v15, 8 }
  0x37   :  { %vm65_vm0 = vcmp.gt.s32.totalorder %v64_v11, 0 }
  0x38   :  { %v66_v13 = vsel %vm65_vm0, %v64_v11, 0 }
  0x39   :  { %v68_v14 = vand.u32 31, %v66_v13  ;;  %v67_v16 = vshrl.u32 %v66_v13, 5 }
  0x3b   :  { %v69_v17 = vsub.s32 32, %v68_v14  ;;  %v71_v19 = vshll.u32 %v274_v18, %v68_v14  ;;  %v74_v21 = vshll.u32 %v275_v20, %v68_v14  ;;  %v77_v23 = vshll.u32 %v276_v22, %v68_v14 }
  0x3c   :  { %v80_v25 = vshll.u32 %v277_v24, %v68_v14  ;;  %v83_v27 = vshll.u32 %v278_v26, %v68_v14  ;;  %vm86_vm1 = vcmp.lt.s32.totalorder %v67_v16, 1  ;;  %vm89_vm2 = vcmp.lt.s32.totalorder %v67_v16, 4 }
  0x3d   :  { %v70_v28 = vshrl.u32 %v274_v18, %v69_v17  ;;  %v72_v29 = vshrl.u32 %v275_v20, %v69_v17  ;;  %v75_v30 = vshrl.u32 %v276_v22, %v69_v17  ;;  %v78_v31 = vshrl.u32 %v277_v24, %v69_v17 }
  0x3e   :  { %v81_v32 = vshrl.u32 %v278_v26, %v69_v17  ;;  %v84_v34 = vshrl.u32 %v279_v33, %v69_v17  ;;  %vm87_vm3 = vcmp.lt.s32.totalorder %v67_v16, 2  ;;  %vm88_vm4 = vcmp.lt.s32.totalorder %v67_v16, 3  ;;  %v158_v33 = vld [vmem:[#allocation5] sm:$0xff] }
  0x3f   :  { %v73_v36 = vor.u32 %v72_v29, %v71_v19  ;;  %v76_v37 = vor.u32 %v75_v30, %v74_v21  ;;  %v79_v38 = vor.u32 %v78_v31, %v77_v23 }
  0x40   :  { %v82_v39 = vor.u32 %v81_v32, %v80_v25  ;;  %v85_v40 = vor.u32 %v84_v34, %v83_v27 }
  0x41   :  { %v90_v41 = vsel %vm86_vm1, %v70_v28, %v73_v36  ;;  %v91_v42 = vsel %vm89_vm2, %v79_v38, 2102212464  ;;  %v94_v43 = vsel %vm86_vm1, %v73_v36, %v76_v37  ;;  %v98_v44 = vsel %vm86_vm1, %v76_v37, %v79_v38 }
  0x42   :  { %v92_v45 = vsel %vm88_vm4, %v76_v37, %v91_v42  ;;  %v95_v46 = vsel %vm89_vm2, %v82_v39, 920167782  ;;  %v99_v47 = vsel %vm89_vm2, %v85_v40, 1326507024 }
  0x43   :  { %v96_v48 = vsel %vm88_vm4, %v79_v38, %v95_v46  ;;  %v100_v49 = vsel %vm88_vm4, %v82_v39, %v99_v47  ;;  %v93_v50 = vsel %vm87_vm3, %v90_v41, %v92_v45 }
  0x44   :  { %v97_v51 = vsel %vm87_vm3, %v94_v43, %v96_v48  ;;  %v101_v52 = vsel %vm87_vm3, %v98_v44, %v100_v49  ;;  %v109_v57 = vmul.u32 %v102_v35, %v93_v50 }
  0x45   :  { %v326_v53 = vmul.u32.u64.low %v102_v35, %v101_v52  ;;  %v327_v54 = vmul.u32.u64.high %v102_v35, %v101_v52, %v326_v53  ;;  %v329_v55 = vmul.u32.u64.low %v102_v35, %v97_v51  ;;  %v330_v56 = vmul.u32.u64.high %v102_v35, %v97_v51, %v329_v55 }
  0x47   :  { %vm111_vm5 = vc.u32 %v327_v54, %v329_v55  ;;  %v112_v58 = vadd.s32 1, %v330_v56  ;;  %v110_v5 = vadd.s32 %v329_v55, %v327_v54 }
  0x49   :  { %v113_v59 = vsel %vm111_vm5, %v112_v58, %v330_v56 }
  0x4a   :  { %v114_v60 = vadd.s32 %v113_v59, %v109_v57 }
  0x4c   :  { %v115_v61 = vadd.s32 536870912, %v114_v60 }
  0x4e   :  { %v116_v62 = vshrl.u32 %v115_v61, 30 }
  0x50   :  { %v117_v63 = vshll.u32 %v116_v62, 30  ;;  %v140_v19 = vsub.s32 4, %v116_v62 }
  0x52   :  { %v118_v0 = vsub.s32 %v114_v60, %v117_v63  ;;  %v141_v22 = vsel %vm56_vm7, %v140_v19, %v116_v62 }
  0x53   :  { %v143_v25 = vsel %vm55_vm8, 0, %v141_v22 }
  0x54   :  { %v120_v1 = vsub.s32 0, %v118_v0  ;;  %v147_v26 = vadd.s32 3, %v143_v25 }
  0x56   :  { %v180_v2 = vmin.u32 %v120_v1, %v118_v0  ;;  %v148_v27 = vand.u32 3, %v147_v26 }
  0x58   :  { %v122_v3 = vclz %v180_v2  ;;  %vm153_vm9 = vcmp.eq.s32.totalorder %v148_v27, 2  ;;  %vm150_vm10 = vcmp.eq.s32.totalorder %v148_v27, 0  ;;  %vm149_vm11 = vcmp.lt.s32.totalorder %v148_v27, 2 }
  0x5a   :  { %v181_v4 = vadd.s32 4294967294, %v122_v3 }
  0x5c   :  { %vm182_vm6 = vcmp.lt.s32.totalorder %v181_v4, 0 }
  0x5d   :  { %v125_v7 = vsel %vm182_vm6, 0, %v181_v4 }
  0x5e   :  { %v126_v8 = vsub.s32 32, %v125_v7  ;;  %v127_v10 = vshll.u32 %v118_v0, %v125_v7  ;;  %v130_v11 = vsub.s32 4294967266, %v125_v7 }
  0x60   :  { %v128_v12 = vshrl.u32 %v110_v5, %v126_v8  ;;  %v131_v13 = vadd.s32 127, %v130_v11 }
  0x62   :  { %v129_v14 = vor.u32 %v128_v12, %v127_v10  ;;  %v132_v15 = vshll.u32 %v131_v13, 23 }
  0x64   :  { %v133_v16 = vor.u32 4788187, %v132_v15  ;;  %v136_v17 = vcvt.s32.f32 %v129_v14 }
  0x66   :  { %v134_v18 = vand.u32 2147483647, %v133_v16 }
  0x68   :  { %v137_v20 = vmul.f32 %v136_v17, %v134_v18 }
  0x6a   :  { %v138_v21 = vxor.u32 2147483648, %v137_v20 }
  0x6c   :  { %v139_v23 = vsel %vm56_vm7, %v138_v21, %v137_v20 }
  0x6d   :  { %v142_v24 = vsel %vm55_vm8, %v320_v6, %v139_v23 }
  0x6e   :  { %196 = vcosq.f32 %v142_v24 }
  0x6f   :  { %198 = vsinq.f32 %v142_v24 }
  0x78   :  { %v197_v28 = vpop.eup %196 }
  0x79   :  { %v199_v29 = vpop.eup %198  ;;  %v154_v30 = vxor.u32 2147483648, %v197_v28 }
  0x7a   :  { %v151_v31 = vxor.u32 2147483648, %v199_v29 }
  0x7b   :  { %v155_v9 = vsel %vm153_vm9, %v154_v30, %v199_v29 }
  0x7c   :  { %v152_v32 = vsel %vm150_vm10, %v197_v28, %v151_v31 }
  0x7d   :  { %v156_v34 = vsel %vm149_vm11, %v152_v32, %v155_v9 }
  0x7e   :  { %v157_v35 = vsel %vm146_vm12, nan, %v156_v34 }
  0x7f   :  { %v159_v36 = vadd.f32 %v158_v33, %v157_v35 }
  0x81   :  { %160 = vst [vmem:[#allocation7] sm:$0xff] %v159_v36 }
  0x82   :  { %255 = shalt.err (!%p252_p6)
}
  0x83   :  { %s256_s8 = scalar_lea.hbm %s355_s2, 128 }
  0x84   :  { %p257_p7 = scmp.ne.s32.totalorder %s355_s2, %s256_s8  ;;  %p260_p8 = scmp.lt.u32.totalorder %s256_s8, %s355_s2 }
  0x86   :  { %p262_p9 = pnand %p260_p8, %p257_p7 }
  0x88   :  { %265 = shalt.err (!%p262_p9)
}
  0x89   :  { %170 = dma.vmem_to_hbm [thread:$0]  %s168_s4, 128, %s355_s2, [#allocation4]  }
  0x8a   :  { %270 = dma.done.wait [#allocation4], 128  }
  0x8b   :  { %271 = vsyncadd [#allocation4], 4294967168 }
  0x8c   :  { %174 = vsyncpa [#allocation3], 1 }
  0x8d   :  { %175 = vsyncpa [#allocation6], 1 }
  0x8e   :  { %176 = vsyncpa [#allocation4], 1 }

</bundles_post_ra>
